<compile_context>
chip_gen: v7x
topology: tpu7x:2x2x1
jax: 0.10.0
libtpu: 0.0.40
codegen_flags: <defaults>
</compile_context>

<pallas_src>
import math

import jax
import jax.numpy as jnp
from jax.experimental import pallas as pl
from jax.experimental.pallas import tpu as pltpu

N_CLASSES = 10
N_HIDDEN = 64
IN_FEATURES = 28 * 28  # 784

H_PAD = 128            # hidden dim padded 64 -> 128 (lane-dense for both dots)
DEFAULT_TB = 1024      # batch tile; ~6.4 MiB double-buffered x at K=784


def _round_up(x, m):
    return ((x + m - 1) // m) * m


def _mlp_kernel(x_ref, w1_ref, b1_ref, w2_ref, b2_ref, o_ref):
    # fc1: (TB, 784) @ (784, 128) + (1, 128), ReLU — kept in vregs (no scratch).
    h = jnp.maximum(
        jnp.dot(x_ref[...], w1_ref[...], preferred_element_type=jnp.float32)
        + b1_ref[...],
        0.0,
    )
    # fc2: (TB, 128) @ (128, 10) + (1, 10) — narrow output block, masked store.
    o_ref[...] = (
        jnp.dot(h, w2_ref[...], preferred_element_type=jnp.float32)
        + b2_ref[...]
    )


def prepare_params(w1, b1, w2, b2):
    """Pad parameters once (hoisted out of the per-call forward).

    w1: (784, 64), b1: (64,), w2: (64, 10), b2: (10,)  ->  lane-friendly shapes.
    All padding is exact zeros (zeros contribute nothing; ReLU(0) = 0).
    """
    w1p = jnp.zeros((IN_FEATURES, H_PAD), jnp.float32).at[:, :N_HIDDEN].set(
        w1.astype(jnp.float32))
    b1p = jnp.zeros((1, H_PAD), jnp.float32).at[0, :N_HIDDEN].set(
        b1.astype(jnp.float32))
    w2p = jnp.zeros((H_PAD, N_CLASSES), jnp.float32).at[:N_HIDDEN, :].set(
        w2.astype(jnp.float32))
    b2p = b2.astype(jnp.float32).reshape(1, N_CLASSES)
    return w1p, b1p, w2p, b2p


def simplenet_forward(x_nchw, padded_params, *, tb=DEFAULT_TB):
    """Forward pass of SimpleNet: relu(flatten(x) @ W1 + b1) @ W2 + b2.

    Args:
      x_nchw: (B, 1, 28, 28) float32 input (NCHW, like PyTorch).
      padded_params: output of prepare_params().

    Returns:
      (B, 10) float32 logits.
    """
    w1p, b1p, w2p, b2p = padded_params
    B = x_nchw.shape[0]

    # Batch tile: multiple of 8, capped at ~B/2 so v7x's 2 TCs both get work
    # when B is moderate; at least 8 to satisfy the sublane constraint.
    tb_eff = min(tb, max(8, _round_up((B + 1) // 2, 8)))
    grid = (pl.cdiv(B, tb_eff),)

    # nn.Flatten(): (B, 1, 28, 28) -> (B, 784).  No padding — passed directly.
    x2d = x_nchw.reshape(B, IN_FEATURES).astype(jnp.float32)

    flops = 2 * B * (IN_FEATURES * N_HIDDEN + N_HIDDEN * N_CLASSES)
    bytes_accessed = 4 * (
        B * (IN_FEATURES + N_CLASSES)
        + IN_FEATURES * H_PAD + H_PAD + H_PAD * N_CLASSES + N_CLASSES)

    out = pl.pallas_call(
        _mlp_kernel,
        out_shape=jax.ShapeDtypeStruct((B, N_CLASSES), jnp.float32),
        grid=grid,
        in_specs=[
            # x: tiled on batch; 784 == full last dim, so (8,128) rule is OK.
            pl.BlockSpec((tb_eff, IN_FEATURES), lambda i: (i, 0)),
            pl.BlockSpec((IN_FEATURES, H_PAD), lambda i: (0, 0)),   # w1 resident
            pl.BlockSpec((1, H_PAD), lambda i: (0, 0)),             # b1 resident
            pl.BlockSpec((H_PAD, N_CLASSES), lambda i: (0, 0)),     # w2 resident
            pl.BlockSpec((1, N_CLASSES), lambda i: (0, 0)),         # b2 resident
        ],
        out_specs=pl.BlockSpec((tb_eff, N_CLASSES), lambda i: (i, 0)),
        compiler_params=pltpu.CompilerParams(
            dimension_semantics=("parallel",),
            # Explicit limit: v5e's scoped default is only 16 MiB; footprint at
            # TB=1024 is <10 MiB, also well under v7x's 64 MiB physical VMEM.
            vmem_limit_bytes=32 * 1024 * 1024,
        ),
        cost_estimate=pl.CostEstimate(
            flops=flops, transcendentals=0, bytes_accessed=bytes_accessed),
    )(x2d, w1p, b1p, w2p, b2p)

    return out


def init_params(key):
    """Deterministic init mimicking torch.nn.Linear defaults
    (uniform bound = 1/sqrt(fan_in)); weights stored as (in, out)."""
    k1, k2, k3, k4 = jax.random.split(key, 4)
    bound1 = 1.0 / math.sqrt(IN_FEATURES)
    bound2 = 1.0 / math.sqrt(N_HIDDEN)
    w1 = jax.random.uniform(k1, (IN_FEATURES, N_HIDDEN), jnp.float32,
                            minval=-bound1, maxval=bound1)
    b1 = jax.random.uniform(k2, (N_HIDDEN,), jnp.float32,
                            minval=-bound1, maxval=bound1)
    w2 = jax.random.uniform(k3, (N_HIDDEN, N_CLASSES), jnp.float32,
                            minval=-bound2, maxval=bound2)
    b2 = jax.random.uniform(k4, (N_CLASSES,), jnp.float32,
                            minval=-bound2, maxval=bound2)
    return w1, b1, w2, b2


if __name__ == "__main__":
    key = jax.random.PRNGKey(0)
    k_x, k_p = jax.random.split(key)

    # Small MNIST-like batch: (B, C, H, W) = (2, 1, 28, 28), NCHW like PyTorch.
    x = jax.random.normal(k_x, (2, 1, 28, 28), dtype=jnp.float32)
    w1, b1, w2, b2 = init_params(k_p)

    padded = prepare_params(w1, b1, w2, b2)   # hoisted: pad params once
    logits = simplenet_forward(x, padded)
    logits = jax.block_until_ready(logits)

    # Sanity check vs. plain-JAX reference of the same math.
    x2d = x.reshape(x.shape[0], -1)
    ref = jnp.maximum(x2d @ w1 + b1, 0.0) @ w2 + b2
    assert logits.shape == (2, N_CLASSES)
    assert jnp.allclose(logits, ref, atol=1e-4, rtol=1e-4), (
        float(jnp.max(jnp.abs(logits - ref))))

    print("KERNEL_OK")
</pallas_src>

<mosaic_0001>
module attributes {stable_mosaic.version = 11 : i64} {
  func.func @_mlp_kernel(%arg0: i32, %arg1: memref<8x784xf32, #tpu.memory_space<vmem>>, %arg2: memref<784x128xf32, #tpu.memory_space<vmem>>, %arg3: memref<1x128xf32, #tpu.memory_space<vmem>>, %arg4: memref<128x10xf32, #tpu.memory_space<vmem>>, %arg5: memref<1x10xf32, #tpu.memory_space<vmem>>, %arg6: memref<8x10xf32, #tpu.memory_space<vmem>>) attributes {dimension_semantics = [#tpu.dimension_semantics<parallel>], iteration_bounds = array<i64: 1>, scalar_prefetch = 0 : i64, scratch_operands = 0 : i64, tpu.core_type = #tpu.core_type<tc>, window_params = [{transform_indices = @transform_0, window_bounds = array<i64: 8, 784>}, {pipeline_mode = #tpu.pipeline_mode<synchronous>, transform_indices = @transform_1, window_bounds = array<i64: 784, 128>}, {pipeline_mode = #tpu.pipeline_mode<synchronous>, transform_indices = @transform_2, window_bounds = array<i64: 1, 128>}, {pipeline_mode = #tpu.pipeline_mode<synchronous>, transform_indices = @transform_3, window_bounds = array<i64: 128, 10>}, {pipeline_mode = #tpu.pipeline_mode<synchronous>, transform_indices = @transform_4, window_bounds = array<i64: 1, 10>}, {transform_indices = @transform_5, window_bounds = array<i64: 8, 10>}]} {
    %c0 = arith.constant 0 : index
    %c0_0 = arith.constant 0 : index
    %0 = vector.load %arg1[%c0, %c0_0] : memref<8x784xf32, #tpu.memory_space<vmem>>, vector<8x784xf32>
    %c0_1 = arith.constant 0 : index
    %c0_2 = arith.constant 0 : index
    %1 = vector.load %arg2[%c0_1, %c0_2] : memref<784x128xf32, #tpu.memory_space<vmem>>, vector<784x128xf32>
    %cst = arith.constant dense<0.000000e+00> : vector<8x128xf32>
    %2 = tpu.matmul %0, %1, %cst {dimension_numbers = #tpu.dot_dimension_numbers<[1], [0], [0], [1], [0, 0, 1, 1], [], []>} : vector<8x784xf32>, vector<784x128xf32>, vector<8x128xf32> -> vector<8x128xf32>
    %c0_3 = arith.constant 0 : index
    %c0_4 = arith.constant 0 : index
    %3 = vector.load %arg3[%c0_3, %c0_4] : memref<1x128xf32, #tpu.memory_space<vmem>>, vector<1x128xf32>
    %4 = vector.broadcast %3 : vector<1x128xf32> to vector<8x128xf32>
    %5 = arith.addf %2, %4 : vector<8x128xf32>
    %cst_5 = arith.constant 0.000000e+00 : f32
    %6 = vector.broadcast %cst_5 : f32 to vector<8x128xf32>
    %7 = arith.maximumf %5, %6 : vector<8x128xf32>
    %c0_6 = arith.constant 0 : index
    %c0_7 = arith.constant 0 : index
    %8 = vector.load %arg4[%c0_6, %c0_7] : memref<128x10xf32, #tpu.memory_space<vmem>>, vector<128x10xf32>
    %cst_8 = arith.constant dense<0.000000e+00> : vector<8x10xf32>
    %9 = tpu.matmul %7, %8, %cst_8 {dimension_numbers = #tpu.dot_dimension_numbers<[1], [0], [0], [1], [0, 0, 1, 1], [], []>} : vector<8x128xf32>, vector<128x10xf32>, vector<8x10xf32> -> vector<8x10xf32>
    %c0_9 = arith.constant 0 : index
    %c0_10 = arith.constant 0 : index
    %10 = vector.load %arg5[%c0_9, %c0_10] : memref<1x10xf32, #tpu.memory_space<vmem>>, vector<1x10xf32>
    %11 = vector.broadcast %10 : vector<1x10xf32> to vector<8x10xf32>
    %12 = arith.addf %9, %11 : vector<8x10xf32>
    %c0_11 = arith.constant 0 : index
    %c0_12 = arith.constant 0 : index
    %13 = vector.load %arg6[%c0_11, %c0_12] : memref<8x10xf32, #tpu.memory_space<vmem>>, vector<8x10xf32>
    tpu.vector_store %arg6[%c0_11, %c0_12], %12 {strides = array<i32>} : memref<8x10xf32, #tpu.memory_space<vmem>>, vector<8x10xf32>,
    return
  }
  func.func @transform_0(%arg0: i32) -> (i32, i32) {
    %c0_i32 = arith.constant 0 : i32
    %c0_i32_0 = arith.constant 0 : i32
    return %arg0, %c0_i32 : i32, i32
  }
  func.func @transform_1(%arg0: i32) -> (i32, i32) {
    %c0_i32 = arith.constant 0 : i32
    %c0_i32_0 = arith.constant 0 : i32
    %c0_i32_1 = arith.constant 0 : i32
    return %c0_i32, %c0_i32_0 : i32, i32
  }
  func.func @transform_2(%arg0: i32) -> (i32, i32) {
    %c0_i32 = arith.constant 0 : i32
    %c0_i32_0 = arith.constant 0 : i32
    %c0_i32_1 = arith.constant 0 : i32
    return %c0_i32, %c0_i32_0 : i32, i32
  }
  func.func @transform_3(%arg0: i32) -> (i32, i32) {
    %c0_i32 = arith.constant 0 : i32
    %c0_i32_0 = arith.constant 0 : i32
    %c0_i32_1 = arith.constant 0 : i32
    return %c0_i32, %c0_i32_0 : i32, i32
  }
  func.func @transform_4(%arg0: i32) -> (i32, i32) {
    %c0_i32 = arith.constant 0 : i32
    %c0_i32_0 = arith.constant 0 : i32
    %c0_i32_1 = arith.constant 0 : i32
    return %c0_i32, %c0_i32_0 : i32, i32
  }
  func.func @transform_5(%arg0: i32) -> (i32, i32) {
    %c0_i32 = arith.constant 0 : i32
    %c0_i32_0 = arith.constant 0 : i32
    return %arg0, %c0_i32 : i32, i32
  }
}

</mosaic_0001>

<bundles_post_ra>
// kernel: tpu_custom_call.1
= control target key start
LH: loop header
LB: loop body
LE: loop exit
PB: predicated region body
PF: predicated region fallthrough
CT: control target
= control target key end

     0   :  { %10 = vsyncpa [#allocation3], 0  ;;  %s1155_s0 = inlined_call_operand.vmem [shape: f32[2,784], index: 0, kind: input, shape index: {}]   ;;  %s1156_s1 = inlined_call_operand.hbm [shape: f32[784,128], index: 1, kind: input, shape index: {}]   ;;  %s1157_s2 = inlined_call_operand.vmem [shape: f32[1,128], index: 2, kind: input, shape index: {}]   ;;  %s1158_s3 = inlined_call_operand.vmem [shape: f32[128,10], index: 3, kind: input, shape index: {}]   ;;  %s1159_s4 = inlined_call_operand.vmem [shape: f32[1,10], index: 4, kind: input, shape index: {}]   ;;  %s1160_s5 = inlined_call_operand.hbm [shape: f32[2,10], index: 5, kind: output, shape index: {}]  }
   0x1   :  { %11 = vsyncpa [#allocation4], 0  ;;  %s992_s18 = smov [#allocation2]   ;;  %s944_s22 = scalar_lea.hbm %s1156_s1, 12544 }
   0x2   :  { %s19_s19 = sshll.u32 %s992_s18, 4  ;;  %p945_p0 = scmp.ne.s32.totalorder %s1156_s1, %s944_s22  ;;  %s20_s19 = int_to_ptr.vmem [resolvable:$true] %s19_s19 }
   0x3   :  { %p948_p1 = scmp.lt.u32.totalorder %s944_s22, %s1156_s1 }
   0x5   :  { %p950_p2 = pnand %p948_p1, %p945_p0 }
   0x7   :  { %953 = shalt.err (!%p950_p2)
}
   0x8   :  { %s954_s27 = scalar_lea.vmem %s20_s19, 12544  ;;  %p959_p4 = scmp.lt.s32.totalorder %s20_s19, %s20_s19 }
   0x9   :  { %p955_p3 = scmp.ne.s32.totalorder %s20_s19, %s954_s27  ;;  %p960_p5 = scmp.lt.s32.totalorder %s954_s27, %s954_s27 }
   0xb   :  { %p961_p6 = por %p960_p5, %p959_p4 }
   0xd   :  { %p962_p7 = pnand %p961_p6, %p955_p3 }
   0xf   :  { %965 = shalt.err (!%p962_p7)
}
  0x10   :  { %s993_s28 = smov 128   ;;  %s994_s29 = smov 8  }
  0x11   :  { %25 = dma.hbm_to_vmem [thread:$0]  %s1156_s1, 12544, %s20_s19, [#allocation3], %s993_s28, %s993_s28, %s994_s29  }
  0x12   :  { %988 = dma.done.wait [#allocation3], 12544  }
  0x13   :  { %989 = vsyncadd [#allocation3], 4294954752  ;;  %v59_v0 = vld [vmem:[#allocation2 + $0x80] sm:$0xff]  ;;  %v60_v1 = vld [vmem:[#allocation2 + $0x88] sm:$0xff]  ;;  %v995_v51 = vmov 1983009808   ;;  %v163_v53 = vlaneseq }
  0x14   :  { %v43_v2 = vld [vmem:[#allocation2] sm:$0xff]  ;;  %v799_v3 = vpack.c.bf16 %v60_v1, %v59_v0  ;;  %v44_v4 = vld [vmem:[#allocation2 + $0x8] sm:$0xff]  ;;  %v61_v11 = vld [vmem:[#allocation2 + $0x90] sm:$0xff]  ;;  %v161_v52 = vunpack.c.l.s4 %v995_v51  ;;  %vm997_vm0 = vmmov 0   ;;  %vm233_vm1 = vcmask 130048  }
  0x15   :  { %v91_v5 = vld [vmem:[#allocation2 + $0x180] sm:$0xff]  ;;  %v92_v6 = vld [vmem:[#allocation2 + $0x188] sm:$0xff]  ;;  %v801_v7 = vpack.c.bf16 %v44_v4, %v43_v2  ;;  %v62_v13 = vld [vmem:[#allocation2 + $0x98] sm:$0xff]  ;;  %vm610_vm2 = vcmask 80896  }
  0x16   :  { %v831_v8 = vpack.c.bf16 %v92_v6, %v91_v5  ;;  %v75_v9 = vld [vmem:[#allocation2 + $0x100] sm:$0xff]  ;;  %v76_v10 = vld [vmem:[#allocation2 + $0x108] sm:$0xff]  ;;  %800 = vmatprep.subr.bf16.mxu0 %v799_v3  ;;  %v45_v14 = vld [vmem:[#allocation2 + $0x10] sm:$0xff]  ;;  %v803_v16 = vpack.c.bf16 %v62_v13, %v61_v11  ;;  %v162_v2 = vunpack.c.0.s8 %v161_v52  ;;  %v164_v3 = vshrl.u32 %v163_v53, 7 }
  0x17   :  { %v833_v12 = vpack.c.bf16 %v76_v10, %v75_v9  ;;  %v46_v15 = vld [vmem:[#allocation2 + $0x18] sm:$0xff]  ;;  %802 = vmatpush3.bf16.msra.mxu0 %v801_v7  ;;  %v93_v18 = vld [vmem:[#allocation2 + $0x190] sm:$0xff]  ;;  %v63_v23 = vld [vmem:[#allocation2 + $0xa0] sm:$0xff] }
  0x18   :  { %832 = vmatprep.subr.bf16.mxu1 %v831_v8  ;;  %v805_v17 = vpack.c.bf16 %v46_v15, %v45_v14  ;;  %v94_v19 = vld [vmem:[#allocation2 + $0x198] sm:$0xff]  ;;  %v77_v20 = vld [vmem:[#allocation2 + $0x110] sm:$0xff]  ;;  %v64_v24 = vld [vmem:[#allocation2 + $0xa8] sm:$0xff]  ;;  %804 = vmatprep.subr.bf16.mxu0 %v803_v16 }
  0x19   :  { %834 = vmatpush3.bf16.msra.mxu1 %v833_v12  ;;  %v835_v21 = vpack.c.bf16 %v94_v19, %v93_v18  ;;  %v78_v22 = vld [vmem:[#allocation2 + $0x118] sm:$0xff]  ;;  %v807_v26 = vpack.c.bf16 %v64_v24, %v63_v23  ;;  %v47_v27 = vld [vmem:[#allocation2 + $0x20] sm:$0xff]  ;;  %v48_v28 = vld [vmem:[#allocation2 + $0x28] sm:$0xff] }
  0x1a   :  { %v837_v25 = vpack.c.bf16 %v78_v22, %v77_v20  ;;  %v95_v29 = vld [vmem:[#allocation2 + $0x1a0] sm:$0xff]  ;;  %v96_v30 = vld [vmem:[#allocation2 + $0x1a8] sm:$0xff]  ;;  %v809_v33 = vpack.c.bf16 %v48_v28, %v47_v27  ;;  %v65_v35 = vld [vmem:[#allocation2 + $0xb0] sm:$0xff] }
  0x1b   :  { %836 = vmatprep.subr.bf16.mxu1 %v835_v21  ;;  %v79_v31 = vld [vmem:[#allocation2 + $0x120] sm:$0xff]  ;;  %v80_v32 = vld [vmem:[#allocation2 + $0x128] sm:$0xff]  ;;  %806 = vmatpush3.bf16.msra.mxu0 %v805_v17  ;;  %v839_v34 = vpack.c.bf16 %v96_v30, %v95_v29  ;;  %v66_v36 = vld [vmem:[#allocation2 + $0xb8] sm:$0xff]  ;;  %v1044_v21 = vsub.s32 %v162_v2, %v164_v3 }
  0x1c   :  { %v49_v37 = vld [vmem:[#allocation2 + $0x30] sm:$0xff]  ;;  %808 = vmatprep.subr.bf16.mxu0 %v807_v26  ;;  %v841_v38 = vpack.c.bf16 %v80_v32, %v79_v31  ;;  %v811_v39 = vpack.c.bf16 %v66_v36, %v65_v35  ;;  %v50_v40 = vld [vmem:[#allocation2 + $0x38] sm:$0xff]  ;;  %v67_v46 = vld [vmem:[#allocation2 + $0xc0] sm:$0xff] }
  0x1d   :  { %838 = vmatpush3.bf16.msra.mxu1 %v837_v25  ;;  %v97_v41 = vld [vmem:[#allocation2 + $0x1b0] sm:$0xff]  ;;  %v98_v42 = vld [vmem:[#allocation2 + $0x1b8] sm:$0xff]  ;;  %v68_v47 = vld [vmem:[#allocation2 + $0xc8] sm:$0xff]  ;;  %v813_v48 = vpack.c.bf16 %v50_v40, %v49_v37 }
  0x1e   :  { %840 = vmatprep.subr.bf16.mxu1 %v839_v34  ;;  %v843_v43 = vpack.c.bf16 %v98_v42, %v97_v41  ;;  %v81_v44 = vld [vmem:[#allocation2 + $0x130] sm:$0xff]  ;;  %v82_v45 = vld [vmem:[#allocation2 + $0x138] sm:$0xff]  ;;  %v99_v49 = vld [vmem:[#allocation2 + $0x1c0] sm:$0xff]  ;;  %v815_v55 = vpack.c.bf16 %v68_v47, %v67_v46 }
  0x1f   :  { %810 = vmatpush3.bf16.msra.mxu0 %v809_v33  ;;  %v100_v50 = vld [vmem:[#allocation2 + $0x1c8] sm:$0xff]  ;;  %v845_v54 = vpack.c.bf16 %v82_v45, %v81_v44  ;;  %v51_v56 = vld [vmem:[#allocation2 + $0x40] sm:$0xff]  ;;  %v69_v61 = vld [vmem:[#allocation2 + $0xd0] sm:$0xff] }
  0x20   :  { %812 = vmatprep.subr.bf16.mxu0 %v811_v39  ;;  %v52_v57 = vld [vmem:[#allocation2 + $0x48] sm:$0xff]  ;;  %v83_v58 = vld [vmem:[#allocation2 + $0x140] sm:$0xff]  ;;  %v847_v59 = vpack.c.bf16 %v100_v50, %v99_v49  ;;  %v70_v62 = vld [vmem:[#allocation2 + $0xd8] sm:$0xff] }
  0x21   :  { %842 = vmatpush3.bf16.msra.mxu1 %v841_v38  ;;  %v84_v60 = vld [vmem:[#allocation2 + $0x148] sm:$0xff]  ;;  %v101_v63 = vld [vmem:[#allocation2 + $0x1d0] sm:$0xff]  ;;  %v102_v0 = vld [vmem:[#allocation2 + $0x1d8] sm:$0xff]  ;;  %v817_v1 = vpack.c.bf16 %v52_v57, %v51_v56  ;;  %v819_v5 = vpack.c.bf16 %v70_v62, %v69_v61 }
  0x22   :  { %844 = vmatprep.subr.bf16.mxu1 %v843_v43  ;;  %v849_v4 = vpack.c.bf16 %v84_v60, %v83_v58  ;;  %v53_v6 = vld [vmem:[#allocation2 + $0x50] sm:$0xff]  ;;  %v54_v7 = vld [vmem:[#allocation2 + $0x58] sm:$0xff]  ;;  %v851_v9 = vpack.c.bf16 %v102_v0, %v101_v63  ;;  %v71_v11 = vld [vmem:[#allocation2 + $0xe0] sm:$0xff]  ;;  %v996_v63 = vmov 0.0|0.0  }
  0x23   :  { %814 = vmatpush3.bf16.msra.mxu0 %v813_v48  ;;  %v85_v8 = vld [vmem:[#allocation2 + $0x150] sm:$0xff]  ;;  %v86_v10 = vld [vmem:[#allocation2 + $0x158] sm:$0xff]  ;;  %v72_v12 = vld [vmem:[#allocation2 + $0xe8] sm:$0xff]  ;;  %v821_v17 = vpack.c.bf16 %v54_v7, %v53_v6 }
  0x24   :  { %816 = vmatprep.subr.bf16.mxu0 %v815_v55  ;;  %v55_v13 = vld [vmem:[#allocation2 + $0x60] sm:$0xff]  ;;  %v56_v14 = vld [vmem:[#allocation2 + $0x68] sm:$0xff]  ;;  %v73_v20 = vld [vmem:[#allocation2 + $0xf0] sm:$0xff]  ;;  %v853_v22 = vpack.c.bf16 %v86_v10, %v85_v8  ;;  %v823_v23 = vpack.c.bf16 %v72_v12, %v71_v11  ;;  %v998_v10 = vmov 0.0  }
  0x25   :  { %846 = vmatpush3.bf16.msra.mxu1 %v845_v54  ;;  %v103_v15 = vld [vmem:[#allocation2 + $0x1e0] sm:$0xff]  ;;  %v104_v16 = vld [vmem:[#allocation2 + $0x1e8] sm:$0xff]  ;;  %v74_v25 = vld [vmem:[#allocation2 + $0xf8] sm:$0xff]  ;;  %v825_v30 = vpack.c.bf16 %v56_v14, %v55_v13 }
  0x26   :  { %848 = vmatprep.subr.bf16.mxu1 %v847_v59  ;;  %v87_v18 = vld [vmem:[#allocation2 + $0x160] sm:$0xff]  ;;  %v88_v19 = vld [vmem:[#allocation2 + $0x168] sm:$0xff]  ;;  %v855_v24 = vpack.c.bf16 %v104_v16, %v103_v15  ;;  %v105_v28 = vld [vmem:[#allocation2 + $0x1f0] sm:$0xff]  ;;  %v827_v36 = vpack.c.bf16 %v74_v25, %v73_v20 }
  0x27   :  { %818 = vmatpush3.bf16.msra.mxu0 %v817_v1  ;;  %v932_v26 = vld [vmem:[%s1155_s0] ss:$14 sps:$4 sm:$0xff]   ;;  %v934_v27 = vld [vmem:[%s1155_s0 + $0x1c] ss:$14 sps:$4 sm:$0xff]   ;;  %v936_v33 = vld [vmem:[%s1155_s0 + $0x4] ss:$14 sps:$4 sm:$0xff]   ;;  %v857_v35 = vpack.c.bf16 %v88_v19, %v87_v18 }
  0x28   :  { %820 = vmatprep.subr.bf16.mxu0 %v819_v5  ;;  %v106_v29 = vld [vmem:[#allocation2 + $0x1f8] sm:$0xff]  ;;  %v166_v31 = vrot.slane %v932_v26, %v1044_v21  ;;  %v180_v32 = vrot.slane %v934_v27, %v1044_v21  ;;  %v937_v34 = vld [vmem:[%s1155_s0 + $0x20] ss:$14 sps:$4 sm:$0xff]   ;;  %v173_v45 = vrot.slane %v936_v33, %v1044_v21  ;;  %v941_v7 = vld [vmem:[%s1155_s0 + $0x24] ss:$14 sps:$4 sm:$0xff]  }
  0x29   :  { %850 = vmatpush3.bf16.msra.mxu1 %v849_v4  ;;  %v57_v37 = vld [vmem:[#allocation2 + $0x70] sm:$0xff]  ;;  %v58_v38 = vld [vmem:[#allocation2 + $0x78] sm:$0xff]  ;;  %v859_v40 = vpack.c.bf16 %v106_v29, %v105_v28  ;;  %v123_v43 = vld [vmem:[#allocation2 + $0x280] sm:$0xff]  ;;  %v187_v46 = vrot.slane %v937_v34, %v1044_v21  ;;  %v216_v16 = vrot.slane %v941_v7, %v1044_v21 }
  0x2a   :  { %852 = vmatprep.subr.bf16.mxu1 %v851_v9  ;;  %v89_v39 = vld [vmem:[#allocation2 + $0x170] sm:$0xff]  ;;  %v189_v41 = vcombine.high %v166_v31, %v180_v32  ;;  %v90_v42 = vld [vmem:[#allocation2 + $0x178] sm:$0xff]  ;;  %v124_v44 = vld [vmem:[#allocation2 + $0x288] sm:$0xff]  ;;  %v829_v47 = vpack.c.bf16 %v58_v38, %v57_v37  ;;  %v188_v55 = vcombine.low %v166_v31, %v180_v32 }
  0x2b   :  { %822 = vmatpush3.bf16.msra.mxu0 %v821_v17  ;;  %v191_v48 = vcombine.high %v173_v45, %v187_v46  ;;  %v861_v49 = vpack.c.bf16 %v90_v42, %v89_v39  ;;  %v863_v50 = vpack.c.bf16 %v124_v44, %v123_v43  ;;  %v107_v51 = vld [vmem:[#allocation2 + $0x200] sm:$0xff]  ;;  %v108_v52 = vld [vmem:[#allocation2 + $0x208] sm:$0xff]  ;;  %v125_v53 = vld [vmem:[#allocation2 + $0x290] sm:$0xff]  ;;  %v190_v57 = vcombine.low %v173_v45, %v187_v46 }
  0x2c   :  { %824 = vmatprep.subr.bf16.mxu0 %v823_v23  ;;  %300 = vmatprep.mubr.f32.mxu0 %v189_v41  ;;  %v126_v54 = vld [vmem:[#allocation2 + $0x298] sm:$0xff]  ;;  %v865_v56 = vpack.c.bf16 %v108_v52, %v107_v51  ;;  %v109_v59 = vld [vmem:[#allocation2 + $0x210] sm:$0xff]  ;;  %v127_v61 = vld [vmem:[#allocation2 + $0x2a0] sm:$0xff] }
  0x2d   :  { %854 = vmatpush3.bf16.msra.mxu1 %v853_v22  ;;  %370 = vmatprep.mubr.f32.mxu1 %v191_v48  ;;  %v867_v58 = vpack.c.bf16 %v126_v54, %v125_v53  ;;  %v110_v60 = vld [vmem:[#allocation2 + $0x218] sm:$0xff]  ;;  %v128_v62 = vld [vmem:[#allocation2 + $0x2a8] sm:$0xff]  ;;  %v111_v0 = vld [vmem:[#allocation2 + $0x220] sm:$0xff] }
  0x2e   :  { %856 = vmatprep.subr.bf16.mxu1 %v855_v24  ;;  %v112_v1 = vld [vmem:[#allocation2 + $0x228] sm:$0xff]  ;;  %v869_v2 = vpack.c.bf16 %v110_v60, %v109_v59  ;;  %v139_v5 = vld [vmem:[#allocation2 + $0x300] sm:$0xff]  ;;  %v871_v6 = vpack.c.bf16 %v128_v62, %v127_v61  ;;  %v129_v11 = vld [vmem:[#allocation2 + $0x2b0] sm:$0xff] }
  0x2f   :  { %826 = vmatpush3.bf16.msra.mxu0 %v825_v30  ;;  %v938_v3 = vld [vmem:[%s1155_s0 + $0x8] ss:$14 sps:$4 sm:$0xff]   ;;  %v940_v4 = vld [vmem:[%s1155_s0 + $0xc] ss:$14 sps:$4 sm:$0x33]   ;;  %v873_v18 = vpack.c.bf16 %v112_v1, %v111_v0  ;;  %v131_v25 = vld [vmem:[#allocation2 + $0x2c0] sm:$0xff] }
  0x30   :  { %828 = vmatprep.subr.bf16.mxu0 %v827_v36  ;;  %v943_v8 = vld [vmem:[%s1155_s0 + $0x28] ss:$14 sps:$4 sm:$0x33]   ;;  %v130_v12 = vld [vmem:[#allocation2 + $0x2b8] sm:$0xff]  ;;  %v202_v13 = vrot.slane %v938_v3, %v1044_v21  ;;  %v209_v14 = vrot.slane %v940_v4, %v1044_v21  ;;  %v115_v28 = vld [vmem:[#allocation2 + $0x240] sm:$0xff] }
  0x31   :  { %858 = vmatpush3.bf16.msra.mxu1 %v857_v35  ;;  %v140_v9 = vld [vmem:[#allocation2 + $0x308] sm:$0xff]  ;;  %v223_v17 = vrot.slane %v943_v8, %v1044_v21  ;;  %v875_v19 = vpack.c.bf16 %v130_v12, %v129_v11  ;;  %v113_v20 = vld [vmem:[#allocation2 + $0x230] sm:$0xff]  ;;  %v114_v22 = vld [vmem:[#allocation2 + $0x238] sm:$0xff] }
  0x32   :  { %860 = vmatprep.subr.bf16.mxu1 %v859_v40  ;;  %v896_v15 = vpack.c.bf16 %v140_v9, %v139_v5  ;;  %v225_v23 = vcombine.high %v202_v13, %v216_v16  ;;  %v132_v26 = vld [vmem:[#allocation2 + $0x2c8] sm:$0xff]  ;;  %v877_v27 = vpack.c.bf16 %v114_v22, %v113_v20  ;;  %v133_v30 = vld [vmem:[#allocation2 + $0x2d0] sm:$0xff]  ;;  %v134_v31 = vld [vmem:[#allocation2 + $0x2d8] sm:$0xff] }
  0x33   :  { %830 = vmatpush3.bf16.msra.mxu0 %v829_v47  ;;  %v226_v24 = vcombine.low %v209_v14, %v223_v17  ;;  %v879_v21 = vpack.c.bf16 %v132_v26, %v131_v25  ;;  %v116_v29 = vld [vmem:[#allocation2 + $0x248] sm:$0xff]  ;;  %v883_v33 = vpack.c.bf16 %v134_v31, %v133_v30  ;;  %v117_v34 = vld [vmem:[#allocation2 + $0x250] sm:$0xff]  ;;  %v118_v35 = vld [vmem:[#allocation2 + $0x258] sm:$0xff] }
  0x34   :  { %864 = vmatprep.subr.bf16.mxu0 %v863_v50  ;;  %v881_v32 = vpack.c.bf16 %v116_v29, %v115_v28  ;;  %v135_v36 = vld [vmem:[#allocation2 + $0x2e0] sm:$0xff]  ;;  %v136_v37 = vld [vmem:[#allocation2 + $0x2e8] sm:$0xff]  ;;  %v885_v38 = vpack.c.bf16 %v118_v35, %v117_v34  ;;  %v137_v42 = vld [vmem:[#allocation2 + $0x2f0] sm:$0xff] }
  0x35   :  { %862 = vmatpush3.bf16.msra.mxu1 %v861_v49  ;;  %v887_v39 = vpack.c.bf16 %v136_v37, %v135_v36  ;;  %v119_v40 = vld [vmem:[#allocation2 + $0x260] sm:$0xff]  ;;  %v120_v41 = vld [vmem:[#allocation2 + $0x268] sm:$0xff]  ;;  %v138_v43 = vld [vmem:[#allocation2 + $0x2f8] sm:$0xff]  ;;  %v224_v49 = vcombine.low %v202_v13, %v216_v16 }
  0x36   :  { %895 = vmatprep.subr.bf16.mxu1 %v996_v63  ;;  %301 = vmatmul.mubr.f32.vlgmr.msra.gmra.mrb[0].mxu0 %v188_v55  ;;  %v889_v44 = vpack.c.bf16 %v120_v41, %v119_v40  ;;  %v891_v45 = vpack.c.bf16 %v138_v43, %v137_v42  ;;  %v121_v46 = vld [vmem:[#allocation2 + $0x270] sm:$0xff]  ;;  %v122_v47 = vld [vmem:[#allocation2 + $0x278] sm:$0xff]  ;;  %v517_v50 = vld [vmem:[%s1158_s3] sm:$0xff] }
  0x37   :  { %866 = vmatpush3.bf16.msra.mxu0 %v865_v56  ;;  %440 = vmatprep.mubr.f32.mxu0 %v225_v23  ;;  %v893_v48 = vpack.c.bf16 %v122_v47, %v121_v46  ;;  %v518_v51 = vld [vmem:[%s1158_s3 + $0x8] sm:$0xff]  ;;  %v519_v52 = vld [vmem:[%s1158_s3 + $0x10] sm:$0xff]  ;;  %v520_v54 = vld [vmem:[%s1158_s3 + $0x18] sm:$0xff] }
  0x38   :  { %371 = vmatmul.mubr.f32.vlgmr.msra.gmra.mrb[0].mxu1 %v190_v57  ;;  %868 = vmatprep.subr.bf16.mxu0 %v867_v58  ;;  %v899_v53 = vpack.c.bf16 %v518_v51, %v517_v50  ;;  %v902_v55 = vpack.c.bf16 %v520_v54, %v519_v52  ;;  %v521_v56 = vld [vmem:[%s1158_s3 + $0x20] sm:$0xff]  ;;  %v522_v57 = vld [vmem:[%s1158_s3 + $0x28] sm:$0xff]  ;;  %v523_v59 = vld [vmem:[%s1158_s3 + $0x30] sm:$0xff] }
  0x39   :  { %761 = vmatprep.mubr.msk.f32.mxu1 %vm997_vm0, %v998_v10  ;;  %897 = vmatpush3.bf16.msra.mxu1 %v896_v15  ;;  %v905_v58 = vpack.c.bf16 %v522_v57, %v521_v56  ;;  %v524_v60 = vld [vmem:[%s1158_s3 + $0x38] sm:$0xff]  ;;  %v525_v62 = vld [vmem:[%s1158_s3 + $0x40] sm:$0xff]  ;;  %v526_v0 = vld [vmem:[%s1158_s3 + $0x48] sm:$0xff] }
  0x3a   :  { %898 = vmatprep.subr.bf16.mxu1 %v996_v63  ;;  %v908_v61 = vpack.c.bf16 %v524_v60, %v523_v59  ;;  %v911_v1 = vpack.c.bf16 %v526_v0, %v525_v62  ;;  %v528_v3 = vld [vmem:[%s1158_s3 + $0x58] sm:$0xff]  ;;  %v529_v5 = vld [vmem:[%s1158_s3 + $0x60] sm:$0xff]  ;;  %v531_v8 = vld [vmem:[%s1158_s3 + $0x70] sm:$0xff] }
  0x3b   :  { %870 = vmatpush3.bf16.msra.mxu0 %v869_v2  ;;  %v527_v2 = vld [vmem:[%s1158_s3 + $0x50] sm:$0xff]  ;;  %v532_v9 = vld [vmem:[%s1158_s3 + $0x78] sm:$0xff]  ;;  %v629_v12 = vld [vmem:[%s1157_s2] ss:$0 sm:$0xff] }
  0x3c   :  { %872 = vmatprep.subr.bf16.mxu0 %v871_v6  ;;  %762 = vmatmul.mubr.msk.f32.vlgmr.msra.gmra.mrb[2].mxu1 %vm233_vm1, %v226_v24  ;;  %v914_v4 = vpack.c.bf16 %v528_v3, %v527_v2  ;;  %v530_v6 = vld [vmem:[%s1158_s3 + $0x68] sm:$0xff] }
  0x3d   :  { %796 = vmatprep.mubr.msk.f32.mxu1 %vm997_vm0, %v998_v10  ;;  %900 = vmatpush3.bf16.msra.mxu1 %v899_v53  ;;  %v917_v7 = vpack.c.bf16 %v530_v6, %v529_v5  ;;  %v920_v10 = vpack.c.bf16 %v532_v9, %v531_v8 }
  0x3e   :  { %901 = vmatprep.subr.bf16.mxu1 %v996_v63 }
  0x3f   :  { %874 = vmatpush3.bf16.msra.mxu0 %v873_v18 }
  0x40   :  { %876 = vmatprep.subr.bf16.mxu0 %v875_v19 }
  0x41   :  { %903 = vmatpush3.bf16.msra.mxu1 %v902_v55 }
  0x42   :  { %904 = vmatprep.subr.bf16.mxu1 %v996_v63 }
  0x43   :  { %878 = vmatpush3.bf16.msra.mxu0 %v877_v27 }
  0x44   :  { %880 = vmatprep.subr.bf16.mxu0 %v879_v21  ;;  %v631_v21 = vld [vmem:[%s1159_s4] ss:$0 sm:$0xff] }
  0x45   :  { %906 = vmatpush3.bf16.msra.mxu1 %v905_v58 }
  0x46   :  { %907 = vmatprep.subr.bf16.mxu1 %v996_v63 }
  0x47   :  { %882 = vmatpush3.bf16.msra.mxu0 %v881_v32 }
  0x48   :  { %884 = vmatprep.subr.bf16.mxu0 %v883_v33 }
  0x49   :  { %909 = vmatpush3.bf16.msra.mxu1 %v908_v61 }
  0x4a   :  { %910 = vmatprep.subr.bf16.mxu1 %v996_v63 }
  0x4b   :  { %886 = vmatpush3.bf16.msra.mxu0 %v885_v38 }
  0x4c   :  { %888 = vmatprep.subr.bf16.mxu0 %v887_v39 }
  0x4d   :  { %912 = vmatpush3.bf16.msra.mxu1 %v911_v1 }
  0x4e   :  { %913 = vmatprep.subr.bf16.mxu1 %v996_v63 }
  0x4f   :  { %890 = vmatpush3.bf16.msra.mxu0 %v889_v44 }
  0x50   :  { %892 = vmatprep.subr.bf16.mxu0 %v891_v45 }
  0x51   :  { %915 = vmatpush3.bf16.msra.mxu1 %v914_v4 }
  0x52   :  { %916 = vmatprep.subr.bf16.mxu1 %v996_v63 }
  0x53   :  { %894 = vmatpush3.bf16.msra.mxu0 %v893_v48 }
  0x55   :  { %918 = vmatpush3.bf16.msra.mxu1 %v917_v7 }
  0x56   :  { %441 = vmatmul.mubr.f32.vlgmr.msra.gmra.mrb[2].mxu0 %v224_v49  ;;  %919 = vmatprep.subr.bf16.mxu1 %v996_v63 }
  0x59   :  { %921 = vmatpush3.bf16.msra.mxu1 %v920_v10 }
 0x109   :  { %v664_v11 = vpop.f32.mrb[0].mxu0 }
 0x10a   :  { %v665_v13 = vpop.f32.mrb[1].mxu0 }
 0x10b   :  { %v699_v14 = vpop.f32.mrb[0].mxu1  ;;  %v666_v15 = vadd.f32 %v665_v13, %v664_v11 }
 0x10c   :  { %v700_v16 = vpop.f32.mrb[1].mxu1 }
 0x10d   :  { %v701_v63 = vadd.f32 %v700_v16, %v699_v14  ;;  %v303_v17 = vadd.f32 %v666_v15, %v629_v12 }
 0x10f   :  { %v373_v18 = vadd.f32 %v701_v63, %v303_v17  ;;  %v512_v19 = vpop.f32.mrb[2].mxu1 }
 0x110   :  { %v763_v20 = vpop.f32.mrb[3].mxu1 }
 0x129   :  { %v734_v22 = vpop.f32.mrb[2].mxu0 }
 0x12a   :  { %v735_v23 = vpop.f32.mrb[3].mxu0 }
 0x12b   :  { %v736_v24 = vadd.f32 %v735_v23, %v734_v22 }
 0x12d   :  { %v443_v25 = vadd.f32 %v736_v24, %v373_v18 }
 0x12f   :  { %v513_v26 = vadd.f32 %v512_v19, %v443_v25 }
 0x131   :  { %v516_v27 = vmax.f32 %v513_v26, 0.0 }
 0x133   :  { %797 = vmatmul.mubr.f32.vlgmr.msra.gmra.mrb[4].mxu1 %v516_v27 }
 0x206   :  { %v606_v28 = vpop.f32.mrb[4].mxu1 }
 0x207   :  { %v607_v29 = vadd.f32 %v631_v21, %v606_v28  ;;  %v798_v30 = vpop.f32.mrb[5].mxu1 }
 0x209   :  { %611 = vst.msk [vmem:[#allocation5] sm:$0xff] %vm610_vm2, %v607_v29 }
 0x20a   :  { %616 = vsyncadd [#allocation4], 96  ;;  %s999_s2 = smov [#allocation5]  }
 0x20b   :  { %s617_s29 = sshll.u32 %s999_s2, 4  ;;  %s618_s29 = int_to_ptr.vmem [resolvable:$true] %s617_s29 }
 0x20c   :  { %s966_s30 = scalar_lea.vmem %s618_s29, 32  ;;  %s970_s6 = scalar_lea.vmem %s618_s29, 128 }
 0x20d   :  { %p967_p8 = scmp.ne.s32.totalorder %s618_s29, %s966_s30  ;;  %p971_p9 = scmp.lt.s32.totalorder %s618_s29, %s618_s29 }
 0x20e   :  { %p972_p10 = scmp.lt.s32.totalorder %s970_s6, %s966_s30 }
 0x210   :  { %p973_p11 = por %p972_p10, %p971_p9 }
 0x212   :  { %p974_p12 = pnand %p973_p11, %p967_p8 }
 0x214   :  { %977 = shalt.err (!%p974_p12)
}
 0x215   :  { %s978_s4 = scalar_lea.hbm %s1160_s5, 32 }
 0x216   :  { %p979_p13 = scmp.ne.s32.totalorder %s1160_s5, %s978_s4  ;;  %p982_p0 = scmp.lt.u32.totalorder %s978_s4, %s1160_s5 }
 0x218   :  { %p984_p1 = pnand %p982_p0, %p979_p13 }
 0x21a   :  { %987 = shalt.err (!%p984_p1)
}
 0x21b   :  { %s1000_s12 = smov 32   ;;  %s1001_s13 = smov 2  }
 0x21c   :  { %623 = dma.vmem_to_hbm [thread:$0]  %s618_s29, 32, %s1160_s5, [#allocation4], %s1000_s12, %s1000_s12, %s1001_s13  }
 0x21d   :  { %990 = dma.done.wait [#allocation4], 128  }
 0x21e   :  { %991 = vsyncadd [#allocation4], 4294967168 }
 0x21f   :  { %627 = vsyncpa [#allocation3], 1 }
 0x220   :  { %628 = vsyncpa [#allocation4], 1 }

</bundles_post_ra>
